<compile_context>
chip_gen: v6e
topology: v6e:2x2x1
jax: 0.10.0
libtpu: 0.0.40
codegen_flags: <defaults>
</compile_context>

<pallas_src>
import functools
import math

import jax
import jax.numpy as jnp
from jax.experimental import pallas as pl
from jax.experimental.pallas import tpu as pltpu

LANE = 128
SUBLANE_F32 = 8
SUBLANE_BF16 = 16  # bf16 packs 2 rows/sublane -> align packed-weight row offsets to 16


def _round_up(x, m):
    return (x + m - 1) // m * m


def _make_kernel(zp, kp, pw, p_out):
    """Fused 4-layer MLP. Packed weight row layout: [W1:zp | W2:kp | W3:kp | W4:kp]."""
    r1 = zp
    r2 = zp + kp
    r3 = zp + 2 * kp
    r4 = zp + 3 * kp

    def kernel(z_ref, w_ref, b_ref, out_ref):
        x = z_ref[...]                          # (TILE_B, zp) f32
        b = b_ref[...].astype(jnp.float32)      # (4, pw)   f32 biases (padded)

        # layer 1: Linear(z_dim, dim) + ReLU  (bf16 MXU, f32 accumulate)
        h = jnp.dot(x.astype(jnp.bfloat16), w_ref[0:r1, :],
                    preferred_element_type=jnp.float32) + b[0:1, :]
        h = jnp.maximum(h, 0.0)
        # layer 2: Linear(dim, dim) + ReLU  (contract only the real kp lanes)
        h = jnp.dot(h[:, :kp].astype(jnp.bfloat16), w_ref[r1:r2, :],
                    preferred_element_type=jnp.float32) + b[1:2, :]
        h = jnp.maximum(h, 0.0)
        # layer 3: Linear(dim, dim) + ReLU
        h = jnp.dot(h[:, :kp].astype(jnp.bfloat16), w_ref[r2:r3, :],
                    preferred_element_type=jnp.float32) + b[2:3, :]
        h = jnp.maximum(h, 0.0)
        # layer 4: Linear(dim, 2) -> padded to p_out=128 lanes (lane-dense store)
        y = jnp.dot(h[:, :kp].astype(jnp.bfloat16), w_ref[r3:r4, 0:p_out],
                    preferred_element_type=jnp.float32) + b[3:4, 0:p_out]

        out_ref[...] = y.astype(out_ref.dtype)

    return kernel


def pack_generator_params(params, z_dim, dim, out_dim=2):
    """Zero-pad each layer (padding is inert through the MLP) and pack:
      * weights -> one (zp + 3*kp, pw) bf16 buffer (rows 16-aligned for bf16)
      * biases  -> one (4, pw) f32 buffer
    Hidden width padded to pw >= 128; final output padded to p_out = 128."""
    zp = _round_up(max(z_dim, 1), SUBLANE_BF16)
    kp = _round_up(max(dim, 1), SUBLANE_BF16)
    p_out = _round_up(max(out_dim, 1), LANE)
    pw = max(_round_up(max(dim, 1), LANE), p_out)

    def pad2(a, rows, cols):
        a = jnp.asarray(a, jnp.float32)
        return jnp.zeros((rows, cols), jnp.float32).at[:a.shape[0], :a.shape[1]].set(a)

    w_packed = jnp.concatenate(
        [
            pad2(params["w1"], zp, pw),   # (z_dim, dim) -> (zp, pw)
            pad2(params["w2"], kp, pw),   # (dim, dim)   -> (kp, pw)
            pad2(params["w3"], kp, pw),   # (dim, dim)   -> (kp, pw)
            pad2(params["w4"], kp, pw),   # (dim, 2)     -> (kp, pw)
        ],
        axis=0,
    ).astype(jnp.bfloat16)
    b_packed = jnp.concatenate(
        [
            pad2(params["b1"], 1, pw),
            pad2(params["b2"], 1, pw),
            pad2(params["b3"], 1, pw),
            pad2(params["b4"], 1, pw),
        ],
        axis=0,
    )  # f32, (4, pw)
    meta = dict(z_dim=z_dim, dim=dim, out_dim=out_dim,
                zp=zp, kp=kp, pw=pw, p_out=p_out)
    return w_packed, b_packed, meta


def generator_forward(z, w_packed, b_packed, *, meta, tile_b=256):
    """z: (B, z_dim) float32. Returns (B, out_dim) float32.
    `meta` must be bound statically (Python ints), e.g. via functools.partial."""
    B, z_dim = z.shape
    assert z_dim == meta["z_dim"], (z_dim, meta["z_dim"])
    zp, kp, pw, p_out = meta["zp"], meta["kp"], meta["pw"], meta["p_out"]
    out_dim = meta["out_dim"]

    # Batch tile: multiple of 8 sublanes; prefer multiples of 256 (MXU height)
    # when tuning; the 256 default keeps grid >= 2 for B >= 512 (v7x megacore).
    tile_b = _round_up(max(SUBLANE_F32, min(tile_b, _round_up(B, SUBLANE_F32))),
                       SUBLANE_F32)
    b_pad = _round_up(B, tile_b)

    # Zero-pad z rows to b_pad and features to zp (zeros are inert).
    z_p = jnp.zeros((b_pad, zp), jnp.float32).at[:B, :z_dim].set(
        z.astype(jnp.float32))

    n_rows_w = zp + 3 * kp
    grid = (b_pad // tile_b,)

    flops = 2 * b_pad * (zp * pw + 2 * kp * pw + kp * p_out)
    bytes_accessed = (4 * b_pad * zp          # z (f32)
                      + 2 * n_rows_w * pw     # packed weights (bf16)
                      + 4 * 4 * pw            # packed biases (f32)
                      + 4 * b_pad * p_out)    # output (f32)

    # Approximate VMEM footprint (double-buffered streaming tiles + params);
    # only raise the scoped limit when it is actually tight (v5e default 16 MiB).
    vmem_bytes = (2 * tile_b * zp * 4 + 2 * tile_b * p_out * 4
                  + 2 * n_rows_w * pw * 2 + 2 * 4 * pw * 4)
    cp_kwargs = dict(dimension_semantics=("parallel",))
    if vmem_bytes > (12 << 20):
        cp_kwargs["vmem_limit_bytes"] = int(min(64 << 20, 2 * vmem_bytes))

    out = pl.pallas_call(
        _make_kernel(zp, kp, pw, p_out),
        out_shape=jax.ShapeDtypeStruct((b_pad, p_out), jnp.float32),
        grid=grid,
        in_specs=[
            # streaming activations: one batch tile per grid step
            pl.BlockSpec((tile_b, zp), lambda i: (i, 0)),
            # packed weights / biases: constant block index -> VMEM-resident
            pl.BlockSpec((n_rows_w, pw), lambda i: (0, 0)),
            pl.BlockSpec((4, pw), lambda i: (0, 0)),
        ],
        out_specs=pl.BlockSpec((tile_b, p_out), lambda i: (i, 0)),
        compiler_params=pltpu.CompilerParams(**cp_kwargs),
        cost_estimate=pl.CostEstimate(
            flops=flops, transcendentals=0, bytes_accessed=bytes_accessed),
    )(z_p, w_packed, b_packed)

    return out[:B, :out_dim]


def init_generator_params(key, z_dim, dim):
    """Mirrors PyTorch nn.Linear defaults: U(-1/sqrt(fan_in), 1/sqrt(fan_in))
    for both weight and bias. Weights stored as (in_features, out_features)."""
    sizes = [(z_dim, dim), (dim, dim), (dim, dim), (dim, 2)]
    params = {}
    for i, (fan_in, fan_out) in enumerate(sizes, start=1):
        key, kw, kb = jax.random.split(key, 3)
        bound = 1.0 / math.sqrt(fan_in)
        params[f"w{i}"] = jax.random.uniform(
            kw, (fan_in, fan_out), jnp.float32, minval=-bound, maxval=bound)
        params[f"b{i}"] = jax.random.uniform(
            kb, (1, fan_out), jnp.float32, minval=-bound, maxval=bound)
    return params


def _reference_forward(z, params):
    """Pure-JAX f32 reference."""
    h = jnp.maximum(z @ params["w1"] + params["b1"], 0.0)
    h = jnp.maximum(h @ params["w2"] + params["b2"], 0.0)
    h = jnp.maximum(h @ params["w3"] + params["b3"], 0.0)
    return h @ params["w4"] + params["b4"]


def _reference_forward_bf16(z, params):
    """Pure-JAX reference with the same precision recipe as the kernel
    (bf16 operands into each dot, f32 accumulation, f32 bias/ReLU)."""
    def lin(x, w, b):
        return jnp.dot(x.astype(jnp.bfloat16), w.astype(jnp.bfloat16),
                       preferred_element_type=jnp.float32) + b
    h = jnp.maximum(lin(z, params["w1"], params["b1"]), 0.0)
    h = jnp.maximum(lin(h, params["w2"], params["b2"]), 0.0)
    h = jnp.maximum(lin(h, params["w3"], params["b3"]), 0.0)
    return lin(h, params["w4"], params["b4"])


if __name__ == "__main__":
    key = jax.random.PRNGKey(0)
    k_param, k_z = jax.random.split(key)

    B, Z_DIM, DIM = 512, 8, 32
    params = init_generator_params(k_param, Z_DIM, DIM)
    z = jax.random.normal(k_z, (B, Z_DIM), dtype=jnp.float32)

    w_packed, b_packed, meta = pack_generator_params(params, Z_DIM, DIM)

    # meta (and tile_b) are bound as static Python values, NOT jit arguments,
    # so shape asserts never see tracers.
    run = jax.jit(functools.partial(generator_forward, meta=meta, tile_b=256))
    out = jax.block_until_ready(run(z, w_packed, b_packed))

    ref_f32 = _reference_forward(z, params)
    ref_bf16 = _reference_forward_bf16(z, params)

    assert out.shape == (B, 2), out.shape
    # Tight check vs. a precision-matched (bf16-into-MXU) reference:
    assert jnp.allclose(out, ref_bf16, atol=2e-3, rtol=2e-3), "mismatch vs bf16 ref"
    # Loose sanity check vs. the full-f32 reference (bf16 weight rounding):
    assert jnp.allclose(out, ref_f32, atol=5e-2, rtol=5e-2), "mismatch vs f32 ref"

    print("KERNEL_OK")
</pallas_src>

<mosaic_0001>
module attributes {stable_mosaic.version = 11 : i64} {
  func.func @kernel(%arg0: i32, %arg1: memref<256x16xf32, #tpu.memory_space<vmem>>, %arg2: memref<112x128xbf16, #tpu.memory_space<vmem>>, %arg3: memref<4x128xf32, #tpu.memory_space<vmem>>, %arg4: memref<256x128xf32, #tpu.memory_space<vmem>>) attributes {dimension_semantics = [#tpu.dimension_semantics<parallel>], iteration_bounds = array<i64: 2>, scalar_prefetch = 0 : i64, scratch_operands = 0 : i64, tpu.core_type = #tpu.core_type<tc>, window_params = [{transform_indices = @transform_0, window_bounds = array<i64: 256, 16>}, {pipeline_mode = #tpu.pipeline_mode<synchronous>, transform_indices = @transform_1, window_bounds = array<i64: 112, 128>}, {pipeline_mode = #tpu.pipeline_mode<synchronous>, transform_indices = @transform_2, window_bounds = array<i64: 4, 128>}, {transform_indices = @transform_3, window_bounds = array<i64: 256, 128>}]} {
    %c0 = arith.constant 0 : index
    %c0_0 = arith.constant 0 : index
    %0 = vector.load %arg1[%c0, %c0_0] : memref<256x16xf32, #tpu.memory_space<vmem>>, vector<256x16xf32>
    %c0_1 = arith.constant 0 : index
    %c0_2 = arith.constant 0 : index
    %1 = vector.load %arg3[%c0_1, %c0_2] : memref<4x128xf32, #tpu.memory_space<vmem>>, vector<4x128xf32>
    %2 = arith.truncf %0 : vector<256x16xf32> to vector<256x16xbf16>
    %c0_3 = arith.constant 0 : index
    %c0_4 = arith.constant 0 : index
    %3 = vector.load %arg2[%c0_3, %c0_4] : memref<112x128xbf16, #tpu.memory_space<vmem>>, vector<16x128xbf16>
    %cst = arith.constant dense<0.000000e+00> : vector<256x128xf32>
    %4 = tpu.matmul %2, %3, %cst {dimension_numbers = #tpu.dot_dimension_numbers<[1], [0], [0], [1], [0, 0, 1, 1], [], []>} : vector<256x16xbf16>, vector<16x128xbf16>, vector<256x128xf32> -> vector<256x128xf32>
    %5 = vector.extract_strided_slice %1 {offsets = [0, 0], sizes = [1, 128], strides = [1, 1]} : vector<4x128xf32> to vector<1x128xf32>
    %6 = vector.broadcast %5 : vector<1x128xf32> to vector<256x128xf32>
    %7 = arith.addf %4, %6 : vector<256x128xf32>
    %cst_5 = arith.constant 0.000000e+00 : f32
    %8 = vector.broadcast %cst_5 : f32 to vector<256x128xf32>
    %9 = arith.maximumf %7, %8 : vector<256x128xf32>
    %10 = vector.extract_strided_slice %9 {offsets = [0, 0], sizes = [256, 32], strides = [1, 1]} : vector<256x128xf32> to vector<256x32xf32>
    %11 = arith.truncf %10 : vector<256x32xf32> to vector<256x32xbf16>
    %c16 = arith.constant 16 : index
    %c0_6 = arith.constant 0 : index
    %12 = vector.load %arg2[%c16, %c0_6] : memref<112x128xbf16, #tpu.memory_space<vmem>>, vector<32x128xbf16>
    %cst_7 = arith.constant dense<0.000000e+00> : vector<256x128xf32>
    %13 = tpu.matmul %11, %12, %cst_7 {dimension_numbers = #tpu.dot_dimension_numbers<[1], [0], [0], [1], [0, 0, 1, 1], [], []>} : vector<256x32xbf16>, vector<32x128xbf16>, vector<256x128xf32> -> vector<256x128xf32>
    %14 = vector.extract_strided_slice %1 {offsets = [1, 0], sizes = [1, 128], strides = [1, 1]} : vector<4x128xf32> to vector<1x128xf32>
    %15 = vector.broadcast %14 : vector<1x128xf32> to vector<256x128xf32>
    %16 = arith.addf %13, %15 : vector<256x128xf32>
    %cst_8 = arith.constant 0.000000e+00 : f32
    %17 = vector.broadcast %cst_8 : f32 to vector<256x128xf32>
    %18 = arith.maximumf %16, %17 : vector<256x128xf32>
    %19 = vector.extract_strided_slice %18 {offsets = [0, 0], sizes = [256, 32], strides = [1, 1]} : vector<256x128xf32> to vector<256x32xf32>
    %20 = arith.truncf %19 : vector<256x32xf32> to vector<256x32xbf16>
    %c48 = arith.constant 48 : index
    %c0_9 = arith.constant 0 : index
    %21 = vector.load %arg2[%c48, %c0_9] : memref<112x128xbf16, #tpu.memory_space<vmem>>, vector<32x128xbf16>
    %cst_10 = arith.constant dense<0.000000e+00> : vector<256x128xf32>
    %22 = tpu.matmul %20, %21, %cst_10 {dimension_numbers = #tpu.dot_dimension_numbers<[1], [0], [0], [1], [0, 0, 1, 1], [], []>} : vector<256x32xbf16>, vector<32x128xbf16>, vector<256x128xf32> -> vector<256x128xf32>
    %23 = vector.extract_strided_slice %1 {offsets = [2, 0], sizes = [1, 128], strides = [1, 1]} : vector<4x128xf32> to vector<1x128xf32>
    %24 = vector.broadcast %23 : vector<1x128xf32> to vector<256x128xf32>
    %25 = arith.addf %22, %24 : vector<256x128xf32>
    %cst_11 = arith.constant 0.000000e+00 : f32
    %26 = vector.broadcast %cst_11 : f32 to vector<256x128xf32>
    %27 = arith.maximumf %25, %26 : vector<256x128xf32>
    %28 = vector.extract_strided_slice %27 {offsets = [0, 0], sizes = [256, 32], strides = [1, 1]} : vector<256x128xf32> to vector<256x32xf32>
    %29 = arith.truncf %28 : vector<256x32xf32> to vector<256x32xbf16>
    %c80 = arith.constant 80 : index
    %c0_12 = arith.constant 0 : index
    %30 = vector.load %arg2[%c80, %c0_12] : memref<112x128xbf16, #tpu.memory_space<vmem>>, vector<32x128xbf16>
    %cst_13 = arith.constant dense<0.000000e+00> : vector<256x128xf32>
    %31 = tpu.matmul %29, %30, %cst_13 {dimension_numbers = #tpu.dot_dimension_numbers<[1], [0], [0], [1], [0, 0, 1, 1], [], []>} : vector<256x32xbf16>, vector<32x128xbf16>, vector<256x128xf32> -> vector<256x128xf32>
    %32 = vector.extract_strided_slice %1 {offsets = [3, 0], sizes = [1, 128], strides = [1, 1]} : vector<4x128xf32> to vector<1x128xf32>
    %33 = vector.broadcast %32 : vector<1x128xf32> to vector<256x128xf32>
    %34 = arith.addf %31, %33 : vector<256x128xf32>
    %c0_14 = arith.constant 0 : index
    %c0_15 = arith.constant 0 : index
    %35 = vector.load %arg4[%c0_14, %c0_15] : memref<256x128xf32, #tpu.memory_space<vmem>>, vector<256x128xf32>
    tpu.vector_store %arg4[%c0_14, %c0_15], %34 {strides = array<i32>} : memref<256x128xf32, #tpu.memory_space<vmem>>, vector<256x128xf32>,
    return
  }
  func.func @transform_0(%arg0: i32) -> (i32, i32) {
    %c0_i32 = arith.constant 0 : i32
    %c0_i32_0 = arith.constant 0 : i32
    return %arg0, %c0_i32 : i32, i32
  }
  func.func @transform_1(%arg0: i32) -> (i32, i32) {
    %c0_i32 = arith.constant 0 : i32
    %c0_i32_0 = arith.constant 0 : i32
    %c0_i32_1 = arith.constant 0 : i32
    return %c0_i32, %c0_i32_0 : i32, i32
  }
  func.func @transform_2(%arg0: i32) -> (i32, i32) {
    %c0_i32 = arith.constant 0 : i32
    %c0_i32_0 = arith.constant 0 : i32
    %c0_i32_1 = arith.constant 0 : i32
    return %c0_i32, %c0_i32_0 : i32, i32
  }
  func.func @transform_3(%arg0: i32) -> (i32, i32) {
    %c0_i32 = arith.constant 0 : i32
    %c0_i32_0 = arith.constant 0 : i32
    return %arg0, %c0_i32 : i32, i32
  }
}

</mosaic_0001>

<bundles_post_ra>
// kernel: generator_forward.1
= control target key start
LH: loop header
LB: loop body
LE: loop exit
PB: predicated region body
PF: predicated region fallthrough
CT: control target
= control target key end

     0   :  { %s1704_s12 = smov 0   ;;  %s2032_s0 = inlined_call_operand.vmem [shape: f32[512,16], index: 0, kind: input, shape index: {}]   ;;  %s2033_s1 = inlined_call_operand.vmem [shape: bf16[112,128], index: 1, kind: input, shape index: {}]   ;;  %s2034_s2 = inlined_call_operand.vmem [shape: f32[4,128], index: 2, kind: input, shape index: {}]   ;;  %s2035_s3 = inlined_call_operand.vmem [shape: f32[512,128], index: 3, kind: output, shape index: {}]  }
   0x1 LB: > { %s1366_s13 = sadd.s32 4294967295, %s1682_s12   ;;  %p1370_p0 = scmp.ge.s32.totalorder %s1682_s12, 1  ;;  %s1682_s12 = sphi %s1704_s12, %s13_s12  }
   0x2   : > { %p138_p1 = scmp.lt.s32.totalorder %s1682_s12, 3 }
   0x4   : > { %p139_p2 = pnand %p1370_p0, %p138_p1 }
   0x5   : > { %s1371_s16 = sshll.u32 (!%p139_p2), %s1366_s13, 5 }
   0x6   : > { %142 = sbr.rel (%p139_p2) target bundleno = 894 (0x37e), region = 32  ;;  %p163_p3 = scmp.lt.s32.totalorder (!%p139_p2), %s1371_s16, 63 }
   0xb   : > { %v1669_v0 = vld [vmem:[%s2033_s1] sm:$0xff]   ;;  %s2037_s16 = smov (!%p163_p3, %s1371_s16), 63  ;;  %vm236_vm0 = vcmask 130048   ;;  %v1670_v49 = vld [vmem:[%s2033_s1 + $0x10] sm:$0xff]   ;;  %v1671_v50 = vld [vmem:[%s2033_s1 + $0x8] sm:$0xff]   ;;  %v226_v53 = vlaneseq  ;;  %vm514_vm1 = vcmask 261120  }
   0xc   : > { %1519 = vmatprep.subr.bf16.mxu0 %v1669_v0  ;;  %s1372_s17 = sshll.u32 %s2037_s16, 3  ;;  %1553 = vmatprep.subr.bf16.mxu1 %v1670_v49  ;;  %v1672_v51 = vld [vmem:[%s2033_s1 + $0x20] sm:$0xff]   ;;  %v1673_v52 = vld [vmem:[%s2033_s1 + $0x18] sm:$0xff]  }
   0xd   : > { %1520 = vmatpush3.bf16.msra.mxu0 %v1669_v0  ;;  %s1723_s20 = scalar_lea.vmem %s2032_s0, %s1372_s17  ;;  %1554 = vmatpush3.bf16.msra.mxu1 %v1670_v49  ;;  %v1785_v54 = vshrl.u32 %v226_v53, 7  ;;  %v1791_v56 = vld [vmem:[%s2034_s2] sm:$0xf]  ;;  %s1963_s10 = scalar_lea.vmem %s2035_s3, %s1372_s17 }
   0xe   : > { %v175_v1 = vld [vmem:[%s1723_s20] sm:$0xff]  ;;  %v176_v2 = vld [vmem:[%s1723_s20 + $0x8] sm:$0xff]  ;;  %v177_v3 = vld [vmem:[%s1723_s20 + $0x10] sm:$0xff]  ;;  %1555 = vmatprep.subr.bf16.mxu1 %v1671_v50  ;;  %1589 = vmatprep.subr.bf16.mxu0 %v1672_v51 }
   0xf   : > { %v208_v4 = vpack.c.bf16 %v176_v2, %v175_v1  ;;  %v178_v5 = vld [vmem:[%s1723_s20 + $0x18] sm:$0xff]  ;;  %v179_v6 = vld [vmem:[%s1723_s20 + $0x20] sm:$0xff]  ;;  %v180_v7 = vld [vmem:[%s1723_s20 + $0x28] sm:$0xff]  ;;  %v228_v55 = vsub.s32 0, %v1785_v54 }
  0x10   : > { %v209_v8 = vpack.c.bf16 %v178_v5, %v177_v3  ;;  %v210_v9 = vpack.c.bf16 %v180_v7, %v179_v6  ;;  %v181_v10 = vld [vmem:[%s1723_s20 + $0x30] sm:$0xff]  ;;  %v182_v11 = vld [vmem:[%s1723_s20 + $0x38] sm:$0xff]  ;;  %v183_v12 = vld [vmem:[%s1723_s20 + $0x40] sm:$0xff] }
  0x11   : > { %1521 = vmatprep.mubr.msk.bf16.mxu0 %vm236_vm0, %v208_v4  ;;  %v184_v13 = vld [vmem:[%s1723_s20 + $0x48] sm:$0xff]  ;;  %v211_v14 = vpack.c.bf16 %v182_v11, %v181_v10  ;;  %v185_v16 = vld [vmem:[%s1723_s20 + $0x50] sm:$0xff]  ;;  %v186_v17 = vld [vmem:[%s1723_s20 + $0x58] sm:$0xff]  ;;  %1556 = vmatpush3.bf16.msra.mxu1 %v1671_v50  ;;  %v1794_v58 = vrot.slane %v1791_v56, %v228_v55 }
  0x12   : > { %1522 = vmatmul.mubr.msk.bf16.vlgmr.msra.gmra.mxu0 %vm236_vm0, %v209_v8  ;;  %v212_v15 = vpack.c.bf16 %v184_v13, %v183_v12  ;;  %v187_v18 = vld [vmem:[%s1723_s20 + $0x60] sm:$0xff]  ;;  %v188_v19 = vld [vmem:[%s1723_s20 + $0x68] sm:$0xff]  ;;  %v213_v20 = vpack.c.bf16 %v186_v17, %v185_v16  ;;  %v189_v22 = vld [vmem:[%s1723_s20 + $0x70] sm:$0xff] }
  0x13   : > { %1525 = vmatprep.mubr.msk.bf16.mxu0 %vm236_vm0, %v210_v9  ;;  %v214_v21 = vpack.c.bf16 %v188_v19, %v187_v18  ;;  %v190_v23 = vld [vmem:[%s1723_s20 + $0x78] sm:$0xff]  ;;  %v191_v24 = vld [vmem:[%s1723_s20 + $0x80] sm:$0xff]  ;;  %v192_v25 = vld [vmem:[%s1723_s20 + $0x88] sm:$0xff]  ;;  %1590 = vmatpush3.bf16.msra.mxu0 %v1672_v51 }
  0x14   : > { %v215_v26 = vpack.c.bf16 %v190_v23, %v189_v22  ;;  %v216_v27 = vpack.c.bf16 %v192_v25, %v191_v24  ;;  %v193_v28 = vld [vmem:[%s1723_s20 + $0x90] sm:$0xff]  ;;  %v194_v29 = vld [vmem:[%s1723_s20 + $0x98] sm:$0xff]  ;;  %v195_v30 = vld [vmem:[%s1723_s20 + $0xa0] sm:$0xff]  ;;  %1591 = vmatprep.subr.bf16.mxu0 %v1673_v52 }
  0x15   : > { %v196_v31 = vld [vmem:[%s1723_s20 + $0xa8] sm:$0xff]  ;;  %v217_v32 = vpack.c.bf16 %v194_v29, %v193_v28  ;;  %v197_v34 = vld [vmem:[%s1723_s20 + $0xb0] sm:$0xff]  ;;  %v198_v35 = vld [vmem:[%s1723_s20 + $0xb8] sm:$0xff] }
  0x16   : > { %v218_v33 = vpack.c.bf16 %v196_v31, %v195_v30  ;;  %v199_v36 = vld [vmem:[%s1723_s20 + $0xc0] sm:$0xff]  ;;  %v200_v37 = vld [vmem:[%s1723_s20 + $0xc8] sm:$0xff]  ;;  %v219_v38 = vpack.c.bf16 %v198_v35, %v197_v34  ;;  %v201_v40 = vld [vmem:[%s1723_s20 + $0xd0] sm:$0xff] }
  0x17   : > { %v220_v39 = vpack.c.bf16 %v200_v37, %v199_v36  ;;  %v202_v41 = vld [vmem:[%s1723_s20 + $0xd8] sm:$0xff]  ;;  %v203_v42 = vld [vmem:[%s1723_s20 + $0xe0] sm:$0xff]  ;;  %v204_v43 = vld [vmem:[%s1723_s20 + $0xe8] sm:$0xff]  ;;  %1592 = vmatpush3.bf16.msra.mxu0 %v1673_v52 }
  0x18   : > { %v221_v44 = vpack.c.bf16 %v202_v41, %v201_v40  ;;  %v222_v45 = vpack.c.bf16 %v204_v43, %v203_v42  ;;  %v205_v46 = vld [vmem:[%s1723_s20 + $0xf0] sm:$0xff]  ;;  %v206_v47 = vld [vmem:[%s1723_s20 + $0xf8] sm:$0xff] }
  0x19   : > { %v223_v48 = vpack.c.bf16 %v206_v47, %v205_v46 }
  0x1a   : > { %1526 = vmatmul.mubr.msk.bf16.gmra.mxu0 %vm236_vm0, %v211_v14 }
  0x1b   : > { %1529 = vmatprep.mubr.msk.bf16.mxu0 %vm236_vm0, %v212_v15 }
  0x22   : > { %1530 = vmatmul.mubr.msk.bf16.gmra.mxu0 %vm236_vm0, %v213_v20 }
  0x23   : > { %1533 = vmatprep.mubr.msk.bf16.mxu0 %vm236_vm0, %v214_v21 }
  0x2a   : > { %1534 = vmatmul.mubr.msk.bf16.gmra.mxu0 %vm236_vm0, %v215_v26 }
  0x2b   : > { %1537 = vmatprep.mubr.msk.bf16.mxu0 %vm236_vm0, %v216_v27 }
  0x32   : > { %1538 = vmatmul.mubr.msk.bf16.gmra.mxu0 %vm236_vm0, %v217_v32 }
  0x33   : > { %1541 = vmatprep.mubr.msk.bf16.mxu0 %vm236_vm0, %v218_v33 }
  0x3a   : > { %1542 = vmatmul.mubr.msk.bf16.gmra.mxu0 %vm236_vm0, %v219_v38 }
  0x3b   : > { %1545 = vmatprep.mubr.msk.bf16.mxu0 %vm236_vm0, %v220_v39 }
  0x42   : > { %1546 = vmatmul.mubr.msk.bf16.gmra.mxu0 %vm236_vm0, %v221_v44 }
  0x43   : > { %1549 = vmatprep.mubr.msk.bf16.mxu0 %vm236_vm0, %v222_v45 }
  0x4a   : > { %1550 = vmatmul.mubr.msk.bf16.gmra.mxu0 %vm236_vm0, %v223_v48 }
  0xd2   : > { %v1523_v57 = vpop.f32.mrf.mxu0 }
  0xd3   : > { %v328_v63 = vadd.f32 %v1523_v57, %v1794_v58 }
  0xd4   : > { %v319_v59 = vpop.f32.mrf.mxu0 }
  0xd5   : > { %v320_v61 = vadd.f32 %v319_v59, %v1794_v58  ;;  %v448_v6 = vmax.f32 %v328_v63, 0.0 }
  0xd6   : > { %v1524_v60 = vpop.f32.mrf.mxu0 }
  0xd7   : > { %v331_v62 = vadd.f32 %v1524_v60, %v1794_v58  ;;  %v446_v4 = vmax.f32 %v320_v61, 0.0 }
  0xd8   : > { %v322_v0 = vpop.f32.mrf.mxu0 }
  0xd9   : > { %v323_v1 = vadd.f32 %v322_v0, %v1794_v58  ;;  %v449_v2 = vmax.f32 %v331_v62, 0.0 }
  0xda   : > { %v1527_v3 = vpop.f32.mrf.mxu0 }
  0xdb   : > { %v447_v5 = vmax.f32 %v323_v1, 0.0  ;;  %v479_v9 = vpack.c.bf16 %v449_v2, %v448_v6  ;;  %v344_v13 = vadd.f32 %v1527_v3, %v1794_v58 }
  0xdc   : > { %v335_v7 = vpop.f32.mrf.mxu0 }
  0xdd   : > { %v478_v8 = vpack.c.bf16 %v447_v5, %v446_v4  ;;  %v336_v11 = vadd.f32 %v335_v7, %v1794_v58  ;;  %v452_v20 = vmax.f32 %v344_v13, 0.0 }
  0xde   : > { %v1528_v10 = vpop.f32.mrf.mxu0 }
  0xdf   : > { %v347_v12 = vadd.f32 %v1528_v10, %v1794_v58  ;;  %1557 = vmatprep.mubr.msk.bf16.mxu1 %vm514_vm1, %v478_v8  ;;  %v450_v18 = vmax.f32 %v336_v11, 0.0 }
  0xe0   : > { %v338_v14 = vpop.f32.mrf.mxu0  ;;  %1558 = vmatmul.mubr.msk.bf16.vlgmr.msra.gmra.mxu1 %vm514_vm1, %v479_v9 }
  0xe1   : > { %v339_v15 = vadd.f32 %v338_v14, %v1794_v58  ;;  %v453_v16 = vmax.f32 %v347_v12, 0.0 }
  0xe2   : > { %v1531_v17 = vpop.f32.mrf.mxu0 }
  0xe3   : > { %v451_v19 = vmax.f32 %v339_v15, 0.0  ;;  %v481_v23 = vpack.c.bf16 %v453_v16, %v452_v20  ;;  %v360_v27 = vadd.f32 %v1531_v17, %v1794_v58 }
  0xe4   : > { %v351_v21 = vpop.f32.mrf.mxu0 }
  0xe5   : > { %v480_v22 = vpack.c.bf16 %v451_v19, %v450_v18  ;;  %v352_v25 = vadd.f32 %v351_v21, %v1794_v58  ;;  %v456_v34 = vmax.f32 %v360_v27, 0.0 }
  0xe6   : > { %v1532_v24 = vpop.f32.mrf.mxu0 }
  0xe7   : > { %v363_v26 = vadd.f32 %v1532_v24, %v1794_v58  ;;  %1561 = vmatprep.mubr.msk.bf16.mxu1 %vm514_vm1, %v480_v22  ;;  %v454_v32 = vmax.f32 %v352_v25, 0.0 }
  0xe8   : > { %v354_v28 = vpop.f32.mrf.mxu0  ;;  %1562 = vmatmul.mubr.msk.bf16.gmra.mxu1 %vm514_vm1, %v481_v23 }
  0xe9   : > { %v355_v29 = vadd.f32 %v354_v28, %v1794_v58  ;;  %v457_v30 = vmax.f32 %v363_v26, 0.0 }
  0xea   : > { %v1535_v31 = vpop.f32.mrf.mxu0 }
  0xeb   : > { %v455_v33 = vmax.f32 %v355_v29, 0.0  ;;  %v483_v37 = vpack.c.bf16 %v457_v30, %v456_v34  ;;  %v376_v41 = vadd.f32 %v1535_v31, %v1794_v58 }
  0xec   : > { %v367_v35 = vpop.f32.mrf.mxu0 }
  0xed   : > { %v482_v36 = vpack.c.bf16 %v455_v33, %v454_v32  ;;  %v368_v39 = vadd.f32 %v367_v35, %v1794_v58  ;;  %v460_v48 = vmax.f32 %v376_v41, 0.0 }
  0xee   : > { %v1536_v38 = vpop.f32.mrf.mxu0 }
  0xef   : > { %v379_v40 = vadd.f32 %v1536_v38, %v1794_v58  ;;  %1565 = vmatprep.mubr.msk.bf16.mxu1 %vm514_vm1, %v482_v36  ;;  %v458_v46 = vmax.f32 %v368_v39, 0.0 }
  0xf0   : > { %v370_v42 = vpop.f32.mrf.mxu0  ;;  %1566 = vmatmul.mubr.msk.bf16.gmra.mxu1 %vm514_vm1, %v483_v37 }
  0xf1   : > { %v371_v43 = vadd.f32 %v370_v42, %v1794_v58  ;;  %v461_v44 = vmax.f32 %v379_v40, 0.0 }
  0xf2   : > { %v1539_v45 = vpop.f32.mrf.mxu0 }
  0xf3   : > { %v459_v47 = vmax.f32 %v371_v43, 0.0  ;;  %v485_v51 = vpack.c.bf16 %v461_v44, %v460_v48  ;;  %v392_v57 = vadd.f32 %v1539_v45, %v1794_v58  ;;  %v1674_v45 = vld [vmem:[%s2033_s1 + $0x30] sm:$0xff]  }
  0xf4   : > { %v383_v49 = vpop.f32.mrf.mxu0  ;;  %1625 = vmatprep.subr.bf16.mxu1 %v1674_v45 }
  0xf5   : > { %v484_v50 = vpack.c.bf16 %v459_v47, %v458_v46  ;;  %v384_v53 = vadd.f32 %v383_v49, %v1794_v58  ;;  %v464_v1 = vmax.f32 %v392_v57, 0.0  ;;  %v1675_v46 = vld [vmem:[%s2033_s1 + $0x28] sm:$0xff]   ;;  %1626 = vmatpush3.bf16.msra.mxu1 %v1674_v45 }
  0xf6   : > { %v1540_v52 = vpop.f32.mrf.mxu0  ;;  %1627 = vmatprep.subr.bf16.mxu1 %v1675_v46 }
  0xf7   : > { %v395_v55 = vadd.f32 %v1540_v52, %v1794_v58  ;;  %1569 = vmatprep.mubr.msk.bf16.mxu1 %vm514_vm1, %v484_v50  ;;  %v462_v63 = vmax.f32 %v384_v53, 0.0 }
  0xf8   : > { %v386_v59 = vpop.f32.mrf.mxu0  ;;  %1570 = vmatmul.mubr.msk.bf16.gmra.mxu1 %vm514_vm1, %v485_v51 }
  0xf9   : > { %v387_v60 = vadd.f32 %v386_v59, %v1794_v58  ;;  %v465_v61 = vmax.f32 %v395_v55, 0.0  ;;  %1628 = vmatpush3.bf16.msra.mxu1 %v1675_v46 }
  0xfa   : > { %v1543_v62 = vpop.f32.mrf.mxu0 }
  0xfb   : > { %v463_v0 = vmax.f32 %v387_v60, 0.0  ;;  %v487_v4 = vpack.c.bf16 %v465_v61, %v464_v1  ;;  %v408_v8 = vadd.f32 %v1543_v62, %v1794_v58 }
  0xfc   : > { %v399_v2 = vpop.f32.mrf.mxu0 }
  0xfd   : > { %v486_v3 = vpack.c.bf16 %v463_v0, %v462_v63  ;;  %v400_v6 = vadd.f32 %v399_v2, %v1794_v58  ;;  %v468_v15 = vmax.f32 %v408_v8, 0.0 }
  0xfe   : > { %v1544_v5 = vpop.f32.mrf.mxu0 }
  0xff   : > { %v411_v7 = vadd.f32 %v1544_v5, %v1794_v58  ;;  %1573 = vmatprep.mubr.msk.bf16.mxu1 %vm514_vm1, %v486_v3  ;;  %v466_v13 = vmax.f32 %v400_v6, 0.0 }
 0x100   : > { %v402_v9 = vpop.f32.mrf.mxu0  ;;  %1574 = vmatmul.mubr.msk.bf16.gmra.mxu1 %vm514_vm1, %v487_v4 }
 0x101   : > { %v403_v10 = vadd.f32 %v402_v9, %v1794_v58  ;;  %v469_v11 = vmax.f32 %v411_v7, 0.0 }
 0x102   : > { %v1547_v12 = vpop.f32.mrf.mxu0 }
 0x103   : > { %v467_v14 = vmax.f32 %v403_v10, 0.0  ;;  %v489_v18 = vpack.c.bf16 %v469_v11, %v468_v15  ;;  %v424_v22 = vadd.f32 %v1547_v12, %v1794_v58 }
 0x104   : > { %v415_v16 = vpop.f32.mrf.mxu0 }
 0x105   : > { %v488_v17 = vpack.c.bf16 %v467_v14, %v466_v13  ;;  %v416_v20 = vadd.f32 %v415_v16, %v1794_v58  ;;  %v472_v29 = vmax.f32 %v424_v22, 0.0 }
 0x106   : > { %v1548_v19 = vpop.f32.mrf.mxu0 }
 0x107   : > { %v427_v21 = vadd.f32 %v1548_v19, %v1794_v58  ;;  %1577 = vmatprep.mubr.msk.bf16.mxu1 %vm514_vm1, %v488_v17  ;;  %v470_v27 = vmax.f32 %v416_v20, 0.0 }
 0x108   : > { %v418_v23 = vpop.f32.mrf.mxu0  ;;  %1578 = vmatmul.mubr.msk.bf16.gmra.mxu1 %vm514_vm1, %v489_v18 }
 0x109   : > { %v419_v24 = vadd.f32 %v418_v23, %v1794_v58  ;;  %v473_v25 = vmax.f32 %v427_v21, 0.0 }
 0x10a   : > { %v1551_v26 = vpop.f32.mrf.mxu0 }
 0x10b   : > { %v471_v28 = vmax.f32 %v419_v24, 0.0  ;;  %v491_v32 = vpack.c.bf16 %v473_v25, %v472_v29  ;;  %v440_v36 = vadd.f32 %v1551_v26, %v1794_v58 }
 0x10c   : > { %v431_v30 = vpop.f32.mrf.mxu0 }
 0x10d   : > { %v490_v31 = vpack.c.bf16 %v471_v28, %v470_v27  ;;  %v432_v34 = vadd.f32 %v431_v30, %v1794_v58  ;;  %v476_v42 = vmax.f32 %v440_v36, 0.0 }
 0x10e   : > { %v1552_v33 = vpop.f32.mrf.mxu0 }
 0x10f   : > { %v443_v35 = vadd.f32 %v1552_v33, %v1794_v58  ;;  %1581 = vmatprep.mubr.msk.bf16.mxu1 %vm514_vm1, %v490_v31  ;;  %v474_v40 = vmax.f32 %v432_v34, 0.0 }
 0x110   : > { %v434_v37 = vpop.f32.mrf.mxu0  ;;  %1582 = vmatmul.mubr.msk.bf16.gmra.mxu1 %vm514_vm1, %v491_v32 }
 0x111   : > { %v435_v38 = vadd.f32 %v434_v37, %v1794_v58  ;;  %v477_v39 = vmax.f32 %v443_v35, 0.0  ;;  %v500_v58 = vsub.s32 1, %v1785_v54 }
 0x113   : > { %v475_v41 = vmax.f32 %v435_v38, 0.0  ;;  %v493_v44 = vpack.c.bf16 %v477_v39, %v476_v42  ;;  %v1852_v48 = vrot.slane %v1791_v56, %v500_v58 }
 0x115   : > { %v492_v43 = vpack.c.bf16 %v475_v41, %v474_v40 }
 0x117   : > { %1585 = vmatprep.mubr.msk.bf16.mxu1 %vm514_vm1, %v492_v43 }
 0x118   : > { %1586 = vmatmul.mubr.msk.bf16.gmra.mxu1 %vm514_vm1, %v493_v44 }
 0x1a0   : > { %v1559_v47 = vpop.f32.mrf.mxu1 }
 0x1a1   : > { %v606_v53 = vadd.f32 %v1559_v47, %v1852_v48 }
 0x1a2   : > { %v597_v49 = vpop.f32.mrf.mxu1 }
 0x1a3   : > { %v598_v51 = vadd.f32 %v597_v49, %v1852_v48  ;;  %v726_v63 = vmax.f32 %v606_v53, 0.0 }
 0x1a4   : > { %v1560_v50 = vpop.f32.mrf.mxu1 }
 0x1a5   : > { %v609_v52 = vadd.f32 %v1560_v50, %v1852_v48  ;;  %v724_v61 = vmax.f32 %v598_v51, 0.0 }
 0x1a6   : > { %v600_v55 = vpop.f32.mrf.mxu1 }
 0x1a7   : > { %v601_v57 = vadd.f32 %v600_v55, %v1852_v48  ;;  %v727_v59 = vmax.f32 %v609_v52, 0.0 }
 0x1a8   : > { %v1563_v60 = vpop.f32.mrf.mxu1 }
 0x1a9   : > { %v725_v62 = vmax.f32 %v601_v57, 0.0  ;;  %v757_v2 = vpack.c.bf16 %v727_v59, %v726_v63  ;;  %v622_v6 = vadd.f32 %v1563_v60, %v1852_v48 }
 0x1aa   : > { %v613_v0 = vpop.f32.mrf.mxu1 }
 0x1ab   : > { %v756_v1 = vpack.c.bf16 %v725_v62, %v724_v61  ;;  %v614_v4 = vadd.f32 %v613_v0, %v1852_v48  ;;  %v730_v13 = vmax.f32 %v622_v6, 0.0 }
 0x1ac   : > { %v1564_v3 = vpop.f32.mrf.mxu1 }
 0x1ad   : > { %v625_v5 = vadd.f32 %v1564_v3, %v1852_v48  ;;  %1593 = vmatprep.mubr.msk.bf16.mxu0 %vm514_vm1, %v756_v1  ;;  %v728_v11 = vmax.f32 %v614_v4, 0.0 }
 0x1ae   : > { %v616_v7 = vpop.f32.mrf.mxu1  ;;  %1594 = vmatmul.mubr.msk.bf16.vlgmr.msra.gmra.mxu0 %vm514_vm1, %v757_v2 }
 0x1af   : > { %v617_v8 = vadd.f32 %v616_v7, %v1852_v48  ;;  %v731_v9 = vmax.f32 %v625_v5, 0.0 }
 0x1b0   : > { %v1567_v10 = vpop.f32.mrf.mxu1 }
 0x1b1   : > { %v729_v12 = vmax.f32 %v617_v8, 0.0  ;;  %v759_v16 = vpack.c.bf16 %v731_v9, %v730_v13  ;;  %v638_v20 = vadd.f32 %v1567_v10, %v1852_v48 }
 0x1b2   : > { %v629_v14 = vpop.f32.mrf.mxu1 }
 0x1b3   : > { %v758_v15 = vpack.c.bf16 %v729_v12, %v728_v11  ;;  %v630_v18 = vadd.f32 %v629_v14, %v1852_v48  ;;  %v734_v27 = vmax.f32 %v638_v20, 0.0 }
 0x1b4   : > { %v1568_v17 = vpop.f32.mrf.mxu1 }
 0x1b5   : > { %v641_v19 = vadd.f32 %v1568_v17, %v1852_v48  ;;  %1597 = vmatprep.mubr.msk.bf16.mxu0 %vm514_vm1, %v758_v15  ;;  %v732_v25 = vmax.f32 %v630_v18, 0.0 }
 0x1b6   : > { %v632_v21 = vpop.f32.mrf.mxu1  ;;  %1598 = vmatmul.mubr.msk.bf16.gmra.mxu0 %vm514_vm1, %v759_v16 }
 0x1b7   : > { %v633_v22 = vadd.f32 %v632_v21, %v1852_v48  ;;  %v735_v23 = vmax.f32 %v641_v19, 0.0 }
 0x1b8   : > { %v1571_v24 = vpop.f32.mrf.mxu1 }
 0x1b9   : > { %v733_v26 = vmax.f32 %v633_v22, 0.0  ;;  %v761_v30 = vpack.c.bf16 %v735_v23, %v734_v27  ;;  %v654_v34 = vadd.f32 %v1571_v24, %v1852_v48 }
 0x1ba   : > { %v645_v28 = vpop.f32.mrf.mxu1 }
 0x1bb   : > { %v760_v29 = vpack.c.bf16 %v733_v26, %v732_v25  ;;  %v646_v32 = vadd.f32 %v645_v28, %v1852_v48  ;;  %v738_v41 = vmax.f32 %v654_v34, 0.0 }
 0x1bc   : > { %v1572_v31 = vpop.f32.mrf.mxu1 }
 0x1bd   : > { %v657_v33 = vadd.f32 %v1572_v31, %v1852_v48  ;;  %1601 = vmatprep.mubr.msk.bf16.mxu0 %vm514_vm1, %v760_v29  ;;  %v736_v39 = vmax.f32 %v646_v32, 0.0 }
 0x1be   : > { %v648_v35 = vpop.f32.mrf.mxu1  ;;  %1602 = vmatmul.mubr.msk.bf16.gmra.mxu0 %vm514_vm1, %v761_v30 }
 0x1bf   : > { %v649_v36 = vadd.f32 %v648_v35, %v1852_v48  ;;  %v739_v37 = vmax.f32 %v657_v33, 0.0 }
 0x1c0   : > { %v1575_v38 = vpop.f32.mrf.mxu1 }
 0x1c1   : > { %v737_v40 = vmax.f32 %v649_v36, 0.0  ;;  %v763_v44 = vpack.c.bf16 %v739_v37, %v738_v41  ;;  %v670_v47 = vadd.f32 %v1575_v38, %v1852_v48  ;;  %v778_v38 = vsub.s32 2, %v1785_v54 }
 0x1c2   : > { %v661_v42 = vpop.f32.mrf.mxu1 }
 0x1c3   : > { %v762_v43 = vpack.c.bf16 %v737_v40, %v736_v39  ;;  %v662_v46 = vadd.f32 %v661_v42, %v1852_v48  ;;  %v742_v57 = vmax.f32 %v670_v47, 0.0  ;;  %v1904_v40 = vrot.slane %v1791_v56, %v778_v38 }
 0x1c4   : > { %v1576_v45 = vpop.f32.mrf.mxu1 }
 0x1c5   : > { %v673_v58 = vadd.f32 %v1576_v45, %v1852_v48  ;;  %1605 = vmatprep.mubr.msk.bf16.mxu0 %vm514_vm1, %v762_v43  ;;  %v740_v53 = vmax.f32 %v662_v46, 0.0 }
 0x1c6   : > { %v664_v49 = vpop.f32.mrf.mxu1  ;;  %1606 = vmatmul.mubr.msk.bf16.gmra.mxu0 %vm514_vm1, %v763_v44 }
 0x1c7   : > { %v665_v50 = vadd.f32 %v664_v49, %v1852_v48  ;;  %v743_v51 = vmax.f32 %v673_v58, 0.0 }
 0x1c8   : > { %v1579_v52 = vpop.f32.mrf.mxu1 }
 0x1c9   : > { %v741_v55 = vmax.f32 %v665_v50, 0.0  ;;  %v765_v61 = vpack.c.bf16 %v743_v51, %v742_v57  ;;  %v686_v1 = vadd.f32 %v1579_v52, %v1852_v48 }
 0x1ca   : > { %v677_v59 = vpop.f32.mrf.mxu1 }
 0x1cb   : > { %v764_v60 = vpack.c.bf16 %v741_v55, %v740_v53  ;;  %v678_v63 = vadd.f32 %v677_v59, %v1852_v48  ;;  %v746_v8 = vmax.f32 %v686_v1, 0.0 }
 0x1cc   : > { %v1580_v62 = vpop.f32.mrf.mxu1 }
 0x1cd   : > { %v689_v0 = vadd.f32 %v1580_v62, %v1852_v48  ;;  %1609 = vmatprep.mubr.msk.bf16.mxu0 %vm514_vm1, %v764_v60  ;;  %v744_v6 = vmax.f32 %v678_v63, 0.0 }
 0x1ce   : > { %v680_v2 = vpop.f32.mrf.mxu1  ;;  %1610 = vmatmul.mubr.msk.bf16.gmra.mxu0 %vm514_vm1, %v765_v61 }
 0x1cf   : > { %v681_v3 = vadd.f32 %v680_v2, %v1852_v48  ;;  %v747_v4 = vmax.f32 %v689_v0, 0.0 }
 0x1d0   : > { %v1583_v5 = vpop.f32.mrf.mxu1 }
 0x1d1   : > { %v745_v7 = vmax.f32 %v681_v3, 0.0  ;;  %v767_v11 = vpack.c.bf16 %v747_v4, %v746_v8  ;;  %v702_v15 = vadd.f32 %v1583_v5, %v1852_v48 }
 0x1d2   : > { %v693_v9 = vpop.f32.mrf.mxu1 }
 0x1d3   : > { %v766_v10 = vpack.c.bf16 %v745_v7, %v744_v6  ;;  %v694_v13 = vadd.f32 %v693_v9, %v1852_v48  ;;  %v750_v22 = vmax.f32 %v702_v15, 0.0 }
 0x1d4   : > { %v1584_v12 = vpop.f32.mrf.mxu1 }
 0x1d5   : > { %v705_v14 = vadd.f32 %v1584_v12, %v1852_v48  ;;  %1613 = vmatprep.mubr.msk.bf16.mxu0 %vm514_vm1, %v766_v10  ;;  %v748_v20 = vmax.f32 %v694_v13, 0.0 }
 0x1d6   : > { %v696_v16 = vpop.f32.mrf.mxu1  ;;  %1614 = vmatmul.mubr.msk.bf16.gmra.mxu0 %vm514_vm1, %v767_v11 }
 0x1d7   : > { %v697_v17 = vadd.f32 %v696_v16, %v1852_v48  ;;  %v751_v18 = vmax.f32 %v705_v14, 0.0 }
 0x1d8   : > { %v1587_v19 = vpop.f32.mrf.mxu1 }
 0x1d9   : > { %v749_v21 = vmax.f32 %v697_v17, 0.0  ;;  %v769_v25 = vpack.c.bf16 %v751_v18, %v750_v22  ;;  %v718_v29 = vadd.f32 %v1587_v19, %v1852_v48 }
 0x1da   : > { %v709_v23 = vpop.f32.mrf.mxu1 }
 0x1db   : > { %v768_v24 = vpack.c.bf16 %v749_v21, %v748_v20  ;;  %v710_v27 = vadd.f32 %v709_v23, %v1852_v48  ;;  %v754_v35 = vmax.f32 %v718_v29, 0.0 }
 0x1dc   : > { %v1588_v26 = vpop.f32.mrf.mxu1 }
 0x1dd   : > { %v721_v28 = vadd.f32 %v1588_v26, %v1852_v48  ;;  %1617 = vmatprep.mubr.msk.bf16.mxu0 %vm514_vm1, %v768_v24  ;;  %v752_v33 = vmax.f32 %v710_v27, 0.0 }
 0x1de   : > { %v712_v30 = vpop.f32.mrf.mxu1  ;;  %1618 = vmatmul.mubr.msk.bf16.gmra.mxu0 %vm514_vm1, %v769_v25 }
 0x1df   : > { %v713_v31 = vadd.f32 %v712_v30, %v1852_v48  ;;  %v755_v32 = vmax.f32 %v721_v28, 0.0 }
 0x1e1   : > { %v753_v34 = vmax.f32 %v713_v31, 0.0  ;;  %v771_v37 = vpack.c.bf16 %v755_v32, %v754_v35 }
 0x1e3   : > { %v770_v36 = vpack.c.bf16 %v753_v34, %v752_v33 }
 0x1e5   : > { %1621 = vmatprep.mubr.msk.bf16.mxu0 %vm514_vm1, %v770_v36 }
 0x1e6   : > { %1622 = vmatmul.mubr.msk.bf16.gmra.mxu0 %vm514_vm1, %v771_v37 }
 0x26e   : > { %v1595_v39 = vpop.f32.mrf.mxu0 }
 0x26f   : > { %v883_v44 = vadd.f32 %v1595_v39, %v1904_v40 }
 0x270   : > { %v874_v41 = vpop.f32.mrf.mxu0 }
 0x271   : > { %v875_v48 = vadd.f32 %v874_v41, %v1904_v40  ;;  %v1003_v51 = vmax.f32 %v883_v44, 0.0 }
 0x272   : > { %v1596_v42 = vpop.f32.mrf.mxu0 }
 0x273   : > { %v886_v43 = vadd.f32 %v1596_v42, %v1904_v40  ;;  %v1001_v49 = vmax.f32 %v875_v48, 0.0 }
 0x274   : > { %v877_v45 = vpop.f32.mrf.mxu0 }
 0x275   : > { %v878_v46 = vadd.f32 %v877_v45, %v1904_v40  ;;  %v1004_v58 = vmax.f32 %v886_v43, 0.0 }
 0x276   : > { %v1599_v47 = vpop.f32.mrf.mxu0 }
 0x277   : > { %v1002_v50 = vmax.f32 %v878_v46, 0.0  ;;  %v1034_v55 = vpack.c.bf16 %v1004_v58, %v1003_v51  ;;  %v899_v61 = vadd.f32 %v1599_v47, %v1904_v40 }
 0x278   : > { %v890_v52 = vpop.f32.mrf.mxu0 }
 0x279   : > { %v1033_v53 = vpack.c.bf16 %v1002_v50, %v1001_v49  ;;  %v891_v59 = vadd.f32 %v890_v52, %v1904_v40  ;;  %v1007_v4 = vmax.f32 %v899_v61, 0.0 }
 0x27a   : > { %v1600_v57 = vpop.f32.mrf.mxu0 }
 0x27b   : > { %v902_v60 = vadd.f32 %v1600_v57, %v1904_v40  ;;  %1629 = vmatprep.mubr.msk.bf16.mxu1 %vm514_vm1, %v1033_v53  ;;  %v1005_v2 = vmax.f32 %v891_v59, 0.0 }
 0x27c   : > { %v893_v62 = vpop.f32.mrf.mxu0  ;;  %1630 = vmatmul.mubr.msk.bf16.vlgmr.msra.gmra.mxu1 %vm514_vm1, %v1034_v55 }
 0x27d   : > { %v894_v63 = vadd.f32 %v893_v62, %v1904_v40  ;;  %v1008_v0 = vmax.f32 %v902_v60, 0.0 }
 0x27e   : > { %v1603_v1 = vpop.f32.mrf.mxu0 }
 0x27f   : > { %v1006_v3 = vmax.f32 %v894_v63, 0.0  ;;  %v1036_v7 = vpack.c.bf16 %v1008_v0, %v1007_v4  ;;  %v915_v11 = vadd.f32 %v1603_v1, %v1904_v40 }
 0x280   : > { %v906_v5 = vpop.f32.mrf.mxu0 }
 0x281   : > { %v1035_v6 = vpack.c.bf16 %v1006_v3, %v1005_v2  ;;  %v907_v9 = vadd.f32 %v906_v5, %v1904_v40  ;;  %v1011_v18 = vmax.f32 %v915_v11, 0.0 }
 0x282   : > { %v1604_v8 = vpop.f32.mrf.mxu0 }
 0x283   : > { %v918_v10 = vadd.f32 %v1604_v8, %v1904_v40  ;;  %1633 = vmatprep.mubr.msk.bf16.mxu1 %vm514_vm1, %v1035_v6  ;;  %v1009_v16 = vmax.f32 %v907_v9, 0.0 }
 0x284   : > { %v909_v12 = vpop.f32.mrf.mxu0  ;;  %1634 = vmatmul.mubr.msk.bf16.gmra.mxu1 %vm514_vm1, %v1036_v7 }
 0x285   : > { %v910_v13 = vadd.f32 %v909_v12, %v1904_v40  ;;  %v1012_v14 = vmax.f32 %v918_v10, 0.0 }
 0x286   : > { %v1607_v15 = vpop.f32.mrf.mxu0 }
 0x287   : > { %v1010_v17 = vmax.f32 %v910_v13, 0.0  ;;  %v1038_v21 = vpack.c.bf16 %v1012_v14, %v1011_v18  ;;  %v931_v25 = vadd.f32 %v1607_v15, %v1904_v40 }
 0x288   : > { %v922_v19 = vpop.f32.mrf.mxu0 }
 0x289   : > { %v1037_v20 = vpack.c.bf16 %v1010_v17, %v1009_v16  ;;  %v923_v23 = vadd.f32 %v922_v19, %v1904_v40  ;;  %v1015_v32 = vmax.f32 %v931_v25, 0.0 }
 0x28a   : > { %v1608_v22 = vpop.f32.mrf.mxu0 }
 0x28b   : > { %v934_v24 = vadd.f32 %v1608_v22, %v1904_v40  ;;  %1637 = vmatprep.mubr.msk.bf16.mxu1 %vm514_vm1, %v1037_v20  ;;  %v1013_v30 = vmax.f32 %v923_v23, 0.0 }
 0x28c   : > { %v925_v26 = vpop.f32.mrf.mxu0  ;;  %1638 = vmatmul.mubr.msk.bf16.gmra.mxu1 %vm514_vm1, %v1038_v21 }
 0x28d   : > { %v926_v27 = vadd.f32 %v925_v26, %v1904_v40  ;;  %v1016_v28 = vmax.f32 %v934_v24, 0.0 }
 0x28e   : > { %v1611_v29 = vpop.f32.mrf.mxu0 }
 0x28f   : > { %v1014_v31 = vmax.f32 %v926_v27, 0.0  ;;  %v1040_v35 = vpack.c.bf16 %v1016_v28, %v1015_v32  ;;  %v947_v39 = vadd.f32 %v1611_v29, %v1904_v40  ;;  %v1055_v29 = vsub.s32 3, %v1785_v54 }
 0x290   : > { %v938_v33 = vpop.f32.mrf.mxu0 }
 0x291   : > { %v1039_v34 = vpack.c.bf16 %v1014_v31, %v1013_v30  ;;  %v939_v37 = vadd.f32 %v938_v33, %v1904_v40  ;;  %v1019_v46 = vmax.f32 %v947_v39, 0.0  ;;  %v1956_v30 = vrot.slane %v1791_v56, %v1055_v29 }
 0x292   : > { %v1612_v36 = vpop.f32.mrf.mxu0 }
 0x293   : > { %v950_v38 = vadd.f32 %v1612_v36, %v1904_v40  ;;  %1641 = vmatprep.mubr.msk.bf16.mxu1 %vm514_vm1, %v1039_v34  ;;  %v1017_v44 = vmax.f32 %v939_v37, 0.0 }
 0x294   : > { %v941_v41 = vpop.f32.mrf.mxu0  ;;  %1642 = vmatmul.mubr.msk.bf16.gmra.mxu1 %vm514_vm1, %v1040_v35 }
 0x295   : > { %v942_v42 = vadd.f32 %v941_v41, %v1904_v40  ;;  %v1020_v48 = vmax.f32 %v950_v38, 0.0 }
 0x296   : > { %v1615_v43 = vpop.f32.mrf.mxu0 }
 0x297   : > { %v1018_v45 = vmax.f32 %v942_v42, 0.0  ;;  %v1042_v49 = vpack.c.bf16 %v1020_v48, %v1019_v46  ;;  %v963_v53 = vadd.f32 %v1615_v43, %v1904_v40 }
 0x298   : > { %v954_v58 = vpop.f32.mrf.mxu0 }
 0x299   : > { %v1041_v47 = vpack.c.bf16 %v1018_v45, %v1017_v44  ;;  %v955_v51 = vadd.f32 %v954_v58, %v1904_v40  ;;  %v1023_v63 = vmax.f32 %v963_v53, 0.0 }
 0x29a   : > { %v1616_v50 = vpop.f32.mrf.mxu0 }
 0x29b   : > { %v966_v52 = vadd.f32 %v1616_v50, %v1904_v40  ;;  %1645 = vmatprep.mubr.msk.bf16.mxu1 %vm514_vm1, %v1041_v47  ;;  %v1021_v61 = vmax.f32 %v955_v51, 0.0 }
 0x29c   : > { %v957_v55 = vpop.f32.mrf.mxu0  ;;  %1646 = vmatmul.mubr.msk.bf16.gmra.mxu1 %vm514_vm1, %v1042_v49 }
 0x29d   : > { %v958_v57 = vadd.f32 %v957_v55, %v1904_v40  ;;  %v1024_v59 = vmax.f32 %v966_v52, 0.0 }
 0x29e   : > { %v1619_v60 = vpop.f32.mrf.mxu0 }
 0x29f   : > { %v1022_v62 = vmax.f32 %v958_v57, 0.0  ;;  %v1044_v2 = vpack.c.bf16 %v1024_v59, %v1023_v63  ;;  %v979_v6 = vadd.f32 %v1619_v60, %v1904_v40 }
 0x2a0   : > { %v970_v0 = vpop.f32.mrf.mxu0 }
 0x2a1   : > { %v1043_v1 = vpack.c.bf16 %v1022_v62, %v1021_v61  ;;  %v971_v4 = vadd.f32 %v970_v0, %v1904_v40  ;;  %v1027_v13 = vmax.f32 %v979_v6, 0.0 }
 0x2a2   : > { %v1620_v3 = vpop.f32.mrf.mxu0 }
 0x2a3   : > { %v982_v5 = vadd.f32 %v1620_v3, %v1904_v40  ;;  %1649 = vmatprep.mubr.msk.bf16.mxu1 %vm514_vm1, %v1043_v1  ;;  %v1025_v11 = vmax.f32 %v971_v4, 0.0 }
 0x2a4   : > { %v973_v7 = vpop.f32.mrf.mxu0  ;;  %1650 = vmatmul.mubr.msk.bf16.gmra.mxu1 %vm514_vm1, %v1044_v2 }
 0x2a5   : > { %v974_v8 = vadd.f32 %v973_v7, %v1904_v40  ;;  %v1028_v9 = vmax.f32 %v982_v5, 0.0 }
 0x2a6   : > { %v1623_v10 = vpop.f32.mrf.mxu0 }
 0x2a7   : > { %v1026_v12 = vmax.f32 %v974_v8, 0.0  ;;  %v1046_v16 = vpack.c.bf16 %v1028_v9, %v1027_v13  ;;  %v995_v20 = vadd.f32 %v1623_v10, %v1904_v40 }
 0x2a8   : > { %v986_v14 = vpop.f32.mrf.mxu0 }
 0x2a9   : > { %v1045_v15 = vpack.c.bf16 %v1026_v12, %v1025_v11  ;;  %v987_v18 = vadd.f32 %v986_v14, %v1904_v40  ;;  %v1031_v26 = vmax.f32 %v995_v20, 0.0 }
 0x2aa   : > { %v1624_v17 = vpop.f32.mrf.mxu0 }
 0x2ab   : > { %v998_v19 = vadd.f32 %v1624_v17, %v1904_v40  ;;  %1653 = vmatprep.mubr.msk.bf16.mxu1 %vm514_vm1, %v1045_v15  ;;  %v1029_v24 = vmax.f32 %v987_v18, 0.0 }
 0x2ac   : > { %v989_v21 = vpop.f32.mrf.mxu0  ;;  %1654 = vmatmul.mubr.msk.bf16.gmra.mxu1 %vm514_vm1, %v1046_v16 }
 0x2ad   : > { %v990_v22 = vadd.f32 %v989_v21, %v1904_v40  ;;  %v1032_v23 = vmax.f32 %v998_v19, 0.0 }
 0x2af   : > { %v1030_v25 = vmax.f32 %v990_v22, 0.0  ;;  %v1048_v28 = vpack.c.bf16 %v1032_v23, %v1031_v26 }
 0x2b1   : > { %v1047_v27 = vpack.c.bf16 %v1030_v25, %v1029_v24 }
 0x2b3   : > { %1657 = vmatprep.mubr.msk.bf16.mxu1 %vm514_vm1, %v1047_v27 }
 0x2b4   : > { %1658 = vmatmul.mubr.msk.bf16.gmra.mxu1 %vm514_vm1, %v1048_v28 }
 0x33c   : > { %v1631_v40 = vpop.f32.mrf.mxu1 }
 0x33d   : > { %v1160_v31 = vadd.f32 %v1631_v40, %v1956_v30 }
 0x33e   : > { %v1151_v32 = vpop.f32.mrf.mxu1 }
 0x33f   : > { %1280 = vst [vmem:[%s1963_s10 + $0x10] sm:$0xff] %v1160_v31  ;;  %v1152_v54 = vadd.f32 %v1151_v32, %v1956_v30 }
 0x340   : > { %v1632_v56 = vpop.f32.mrf.mxu1 }
 0x341   : > { %1278 = vst [vmem:[%s1963_s10] sm:$0xff] %v1152_v54  ;;  %v1163_v33 = vadd.f32 %v1632_v56, %v1956_v30 }
 0x342   : > { %v1154_v34 = vpop.f32.mrf.mxu1 }
 0x343   : > { %1281 = vst [vmem:[%s1963_s10 + $0x18] sm:$0xff] %v1163_v33  ;;  %v1155_v35 = vadd.f32 %v1154_v34, %v1956_v30 }
 0x344   : > { %v1635_v36 = vpop.f32.mrf.mxu1 }
 0x345   : > { %1279 = vst [vmem:[%s1963_s10 + $0x8] sm:$0xff] %v1155_v35  ;;  %v1176_v37 = vadd.f32 %v1635_v36, %v1956_v30 }
 0x346   : > { %v1167_v38 = vpop.f32.mrf.mxu1 }
 0x347   : > { %1284 = vst [vmem:[%s1963_s10 + $0x30] sm:$0xff] %v1176_v37  ;;  %v1168_v39 = vadd.f32 %v1167_v38, %v1956_v30 }
 0x348   : > { %v1636_v41 = vpop.f32.mrf.mxu1 }
 0x349   : > { %1282 = vst [vmem:[%s1963_s10 + $0x20] sm:$0xff] %v1168_v39  ;;  %v1179_v42 = vadd.f32 %v1636_v41, %v1956_v30 }
 0x34a   : > { %v1170_v48 = vpop.f32.mrf.mxu1 }
 0x34b   : > { %1285 = vst [vmem:[%s1963_s10 + $0x38] sm:$0xff] %v1179_v42  ;;  %v1171_v43 = vadd.f32 %v1170_v48, %v1956_v30 }
 0x34c   : > { %v1639_v44 = vpop.f32.mrf.mxu1 }
 0x34d   : > { %1283 = vst [vmem:[%s1963_s10 + $0x28] sm:$0xff] %v1171_v43  ;;  %v1192_v45 = vadd.f32 %v1639_v44, %v1956_v30 }
 0x34e   : > { %v1183_v46 = vpop.f32.mrf.mxu1 }
 0x34f   : > { %1288 = vst [vmem:[%s1963_s10 + $0x50] sm:$0xff] %v1192_v45  ;;  %v1184_v58 = vadd.f32 %v1183_v46, %v1956_v30 }
 0x350   : > { %v1640_v47 = vpop.f32.mrf.mxu1 }
 0x351   : > { %1286 = vst [vmem:[%s1963_s10 + $0x40] sm:$0xff] %v1184_v58  ;;  %v1195_v49 = vadd.f32 %v1640_v47, %v1956_v30 }
 0x352   : > { %v1186_v50 = vpop.f32.mrf.mxu1 }
 0x353   : > { %1289 = vst [vmem:[%s1963_s10 + $0x58] sm:$0xff] %v1195_v49  ;;  %v1187_v51 = vadd.f32 %v1186_v50, %v1956_v30 }
 0x354   : > { %v1643_v52 = vpop.f32.mrf.mxu1 }
 0x355   : > { %1287 = vst [vmem:[%s1963_s10 + $0x48] sm:$0xff] %v1187_v51  ;;  %v1208_v53 = vadd.f32 %v1643_v52, %v1956_v30 }
 0x356   : > { %v1199_v55 = vpop.f32.mrf.mxu1 }
 0x357   : > { %1292 = vst [vmem:[%s1963_s10 + $0x70] sm:$0xff] %v1208_v53  ;;  %v1200_v57 = vadd.f32 %v1199_v55, %v1956_v30 }
 0x358   : > { %v1644_v59 = vpop.f32.mrf.mxu1 }
 0x359   : > { %1290 = vst [vmem:[%s1963_s10 + $0x60] sm:$0xff] %v1200_v57  ;;  %v1211_v60 = vadd.f32 %v1644_v59, %v1956_v30 }
 0x35a   : > { %v1202_v61 = vpop.f32.mrf.mxu1 }
 0x35b   : > { %1293 = vst [vmem:[%s1963_s10 + $0x78] sm:$0xff] %v1211_v60  ;;  %v1203_v62 = vadd.f32 %v1202_v61, %v1956_v30 }
 0x35c   : > { %v1647_v63 = vpop.f32.mrf.mxu1 }
 0x35d   : > { %1291 = vst [vmem:[%s1963_s10 + $0x68] sm:$0xff] %v1203_v62  ;;  %v1224_v0 = vadd.f32 %v1647_v63, %v1956_v30 }
 0x35e   : > { %v1215_v1 = vpop.f32.mrf.mxu1 }
 0x35f   : > { %1296 = vst [vmem:[%s1963_s10 + $0x90] sm:$0xff] %v1224_v0  ;;  %v1216_v2 = vadd.f32 %v1215_v1, %v1956_v30 }
 0x360   : > { %v1648_v3 = vpop.f32.mrf.mxu1 }
 0x361   : > { %1294 = vst [vmem:[%s1963_s10 + $0x80] sm:$0xff] %v1216_v2  ;;  %v1227_v4 = vadd.f32 %v1648_v3, %v1956_v30 }
 0x362   : > { %v1218_v5 = vpop.f32.mrf.mxu1 }
 0x363   : > { %1297 = vst [vmem:[%s1963_s10 + $0x98] sm:$0xff] %v1227_v4  ;;  %v1219_v6 = vadd.f32 %v1218_v5, %v1956_v30 }
 0x364   : > { %v1651_v7 = vpop.f32.mrf.mxu1 }
 0x365   : > { %1295 = vst [vmem:[%s1963_s10 + $0x88] sm:$0xff] %v1219_v6  ;;  %v1240_v8 = vadd.f32 %v1651_v7, %v1956_v30 }
 0x366   : > { %v1231_v9 = vpop.f32.mrf.mxu1 }
 0x367   : > { %1300 = vst [vmem:[%s1963_s10 + $0xb0] sm:$0xff] %v1240_v8  ;;  %v1232_v10 = vadd.f32 %v1231_v9, %v1956_v30 }
 0x368   : > { %v1652_v11 = vpop.f32.mrf.mxu1 }
 0x369   : > { %1298 = vst [vmem:[%s1963_s10 + $0xa0] sm:$0xff] %v1232_v10  ;;  %v1243_v12 = vadd.f32 %v1652_v11, %v1956_v30 }
 0x36a   : > { %v1234_v13 = vpop.f32.mrf.mxu1 }
 0x36b   : > { %1301 = vst [vmem:[%s1963_s10 + $0xb8] sm:$0xff] %v1243_v12  ;;  %v1235_v14 = vadd.f32 %v1234_v13, %v1956_v30 }
 0x36c   : > { %v1655_v15 = vpop.f32.mrf.mxu1 }
 0x36d   : > { %1299 = vst [vmem:[%s1963_s10 + $0xa8] sm:$0xff] %v1235_v14  ;;  %v1256_v16 = vadd.f32 %v1655_v15, %v1956_v30 }
 0x36e   : > { %v1247_v17 = vpop.f32.mrf.mxu1 }
 0x36f   : > { %1304 = vst [vmem:[%s1963_s10 + $0xd0] sm:$0xff] %v1256_v16  ;;  %v1248_v18 = vadd.f32 %v1247_v17, %v1956_v30 }
 0x370   : > { %v1656_v19 = vpop.f32.mrf.mxu1 }
 0x371   : > { %1302 = vst [vmem:[%s1963_s10 + $0xc0] sm:$0xff] %v1248_v18  ;;  %v1259_v20 = vadd.f32 %v1656_v19, %v1956_v30 }
 0x372   : > { %v1250_v21 = vpop.f32.mrf.mxu1 }
 0x373   : > { %1305 = vst [vmem:[%s1963_s10 + $0xd8] sm:$0xff] %v1259_v20  ;;  %v1251_v22 = vadd.f32 %v1250_v21, %v1956_v30 }
 0x374   : > { %v1659_v23 = vpop.f32.mrf.mxu1 }
 0x375   : > { %1303 = vst [vmem:[%s1963_s10 + $0xc8] sm:$0xff] %v1251_v22  ;;  %v1272_v24 = vadd.f32 %v1659_v23, %v1956_v30 }
 0x376   : > { %v1263_v25 = vpop.f32.mrf.mxu1 }
 0x377   : > { %1308 = vst [vmem:[%s1963_s10 + $0xf0] sm:$0xff] %v1272_v24  ;;  %v1264_v26 = vadd.f32 %v1263_v25, %v1956_v30 }
 0x378   : > { %v1660_v27 = vpop.f32.mrf.mxu1 }
 0x379   : > { %1306 = vst [vmem:[%s1963_s10 + $0xe0] sm:$0xff] %v1264_v26  ;;  %v1275_v28 = vadd.f32 %v1660_v27, %v1956_v30 }
 0x37a   : > { %v1266_v29 = vpop.f32.mrf.mxu1 }
 0x37b   : > { %1309 = vst [vmem:[%s1963_s10 + $0xf8] sm:$0xff] %v1275_v28  ;;  %v1267_v40 = vadd.f32 %v1266_v29, %v1956_v30 }
 0x37d   : > { %1307 = vst [vmem:[%s1963_s10 + $0xe8] sm:$0xff] %v1267_v40 }
 0x37e PF: > { %s13_s12 = sadd.s32 1, %s1682_s12  }
 0x37f   : > { %p10_p4 = scmp.ge.s32.totalorder %s13_s12, 4  }
 0x381   :  { %12 = sbr.rel (!%p10_p4) target bundleno = 1 (0x1), region = 62 }

</bundles_post_ra>
